<compile_context>
chip_gen: v6e
topology: v6e:2x2x1
jax: 0.10.0
libtpu: 0.0.40
codegen_flags: <defaults>
</compile_context>

<pallas_src>
import functools

import jax
import jax.numpy as jnp
from jax.experimental import pallas as pl
from jax.experimental.pallas import tpu as pltpu

TAU = 1.0  # self.tau in the PyTorch module


def _cluster_loss_kernel(x_ref, wt_ref, wsq_ref, fused_ref, loss_ref, *,
                         n_valid, tau):
    i = pl.program_id(0)
    tile_n = x_ref.shape[0]

    x = x_ref[...].astype(jnp.float32)        # (TN, D) streamed
    w_t = wt_ref[...].astype(jnp.float32)     # (D, K)  resident (pre-transposed)
    w_sq = wsq_ref[...].astype(jnp.float32)   # (1, K)  resident (precomputed)

    # squared euclidean distance via ||x||^2 + ||w||^2 - 2 x.w
    # HIGHEST precision: softmax(-2*dist1) amplifies any matmul error
    # exponentially, so the cross-term must be true-f32 accurate.
    x_sq = jnp.sum(x * x, axis=1, keepdims=True)                     # (TN, 1)
    xw = jax.lax.dot_general(
        x, w_t,
        dimension_numbers=(((1,), (0,)), ((), ())),
        precision=jax.lax.Precision.HIGHEST,
        preferred_element_type=jnp.float32)                          # (TN, K)
    sq = jnp.maximum(x_sq + w_sq - 2.0 * xw, 0.0)   # clamp fp cancellation
    dist1 = tau * sq

    # Fused, stabilized q:  exp(-(d-mean))/sum, squared, renormalized
    #   == softmax(-2*d)   (row-constant shift and first normalizer cancel).
    # Row-min subtraction keeps every exponent <= 0 -> no overflow.
    row_min = jnp.min(dist1, axis=1, keepdims=True)
    q = jnp.exp(-2.0 * (dist1 - row_min))
    q = q / jnp.sum(q, axis=1, keepdims=True)       # exact divide (mem-bound)

    dist2 = dist1 * q

    # Single fused output stream: [dist1 | dist2] along the lane axis.
    fused_ref[...] = jnp.concatenate([dist1, dist2], axis=1).astype(fused_ref.dtype)

    # Per-tile partial loss (padded rows masked out) -> one SMEM scalar.
    row_ids = jax.lax.broadcasted_iota(jnp.int32, (tile_n, 1), 0) + i * tile_n
    row_sums = jnp.sum(dist2, axis=1, keepdims=True)                 # (TN, 1)
    loss_ref[0, 0] = jnp.sum(jnp.where(row_ids < n_valid, row_sums, 0.0))


def _round8(v):
    return max(8, ((int(v) + 7) // 8) * 8)


def _vmem_limit_bytes():
    """Generation-aware VMEM limit (leave headroom under physical capacity)."""
    cap = None
    try:
        cap = getattr(pltpu.get_tpu_info(), "vmem_capacity_bytes", None)
    except Exception:
        cap = None
    if not cap:
        cap = 64 << 20  # conservative fallback: v7x-class 64 MiB per TC
    # v7x (64 MiB)  -> 48 MiB limit;  v5e/v6e (128 MiB) -> 96 MiB limit.
    return int(min(cap * 3 // 4, 96 << 20))


def _pick_tile_n(n, d, k, vmem_limit):
    """Largest multiple-of-8 batch tile whose working set (double-buffered I/O
    plus lane-padded f32 temporaries) fits ~2/3 of the VMEM limit, with a
    nudge toward an even tile count so both v7x TensorCores get whole tiles."""
    budget = vmem_limit * 2 // 3
    lanes = lambda c: ((c + 127) // 128) * 128
    per_row = 4 * (lanes(d) + lanes(2 * k)) * 2   # x in + fused out, x2 buffers
    per_row += 4 * lanes(k) * 6                   # xw, q, dist1, dist2, ... temps
    n8 = _round8(n)
    tile_n = min(_round8(budget // per_row), n8)

    num_tiles = pl.cdiv(n, tile_n)
    if num_tiles == 1 and n8 > 4096:
        # big single tile: split so the second TensorCore isn't idle (v7x).
        tile_n = _round8(pl.cdiv(n8, 2))
    elif num_tiles > 1 and num_tiles % 2 == 1:
        # best-effort: shrink the tile a bit toward an even tile count.
        tile_n = _round8(pl.cdiv(n8, num_tiles + 1))
    return tile_n


def cluster_loss(x, weight, *, tau=TAU, tile_n=None, out_dtype=jnp.float32):
    """x: (N, D), weight: (K, D) -> (dist1 (N, K), dist2 (N, K), loss ())."""
    n, d = x.shape
    k, d2 = weight.shape
    assert d == d2, "feature dims must match"

    vmem_limit = _vmem_limit_bytes()
    if tile_n is None:
        tile_n = _pick_tile_n(n, d, k, vmem_limit)
    tile_n = _round8(tile_n)

    num_tiles = pl.cdiv(n, tile_n)
    n_pad = num_tiles * tile_n
    x_in = jnp.pad(x, ((0, n_pad - n), (0, 0))) if n_pad != n else x

    # Loop-invariant weight prep hoisted to the wrapper (computed once).
    w_f32 = weight.astype(jnp.float32)
    w_t = jnp.transpose(w_f32)                            # (D, K)
    w_sq = jnp.sum(w_f32 * w_f32, axis=1)[None, :]        # (1, K)

    kernel = functools.partial(_cluster_loss_kernel, n_valid=n, tau=tau)

    fused, tile_sums = pl.pallas_call(
        kernel,
        out_shape=(
            jax.ShapeDtypeStruct((n_pad, 2 * k), out_dtype),      # [dist1|dist2]
            jax.ShapeDtypeStruct((num_tiles, 1), jnp.float32),    # per-tile loss
        ),
        grid_spec=pltpu.PrefetchScalarGridSpec(
            num_scalar_prefetch=0,
            grid=(num_tiles,),
            in_specs=[
                pl.BlockSpec((tile_n, d), lambda i: (i, 0)),   # x tiles stream
                pl.BlockSpec((d, k), lambda i: (0, 0)),        # w^T resident
                pl.BlockSpec((1, k), lambda i: (0, 0)),        # ||w||^2 resident
            ],
            out_specs=[
                pl.BlockSpec((tile_n, 2 * k), lambda i: (i, 0)),
                pl.BlockSpec((1, 1), lambda i: (i, 0),
                             memory_space=pltpu.MemorySpace.SMEM),
            ],
        ),
        compiler_params=pltpu.CompilerParams(
            dimension_semantics=("parallel",),   # rows independent -> megacore
            vmem_limit_bytes=vmem_limit,
        ),
    )(x_in, w_t, w_sq)

    dist1 = fused[:n, :k]
    dist2 = fused[:n, k:]
    loss = jnp.sum(tile_sums) / n
    return dist1, dist2, loss


def _reference(x, weight):
    # pure-JAX reference mirroring the PyTorch forward exactly
    diff = x[:, None, :] - weight[None, :, :]
    dist1 = TAU * jnp.sum(jnp.square(diff), axis=2)
    temp = dist1 - jnp.mean(dist1, axis=1, keepdims=True)
    q = jnp.exp(-temp)
    q = q / jnp.sum(q, axis=1, keepdims=True)
    q = q ** 2
    q = q / jnp.sum(q, axis=1, keepdims=True)
    dist2 = dist1 * q
    loss = jnp.mean(jnp.sum(dist2, axis=1))
    return dist1, dist2, loss


def _check(x, weight, **kw):
    dist1, dist2, loss = cluster_loss(x, weight, **kw)
    jax.block_until_ready((dist1, dist2, loss))
    r1, r2, rl = _reference(x, weight)
    assert jnp.allclose(dist1, r1, atol=1e-3, rtol=1e-3)
    assert jnp.allclose(dist2, r2, atol=1e-3, rtol=1e-3)
    assert jnp.allclose(loss, rl, atol=1e-3, rtol=1e-3)


if __name__ == "__main__":
    # config['Model']['predictor'] -> in_features = out_features = 32
    predictor = 32   # feature dim D and number of clusters K
    batch = 8        # N (small, single-tile path)

    key = jax.random.PRNGKey(0)
    kx, kw, kx2 = jax.random.split(key, 3)

    # xavier_uniform_ on weight of shape (out_features, in_features)
    bound = (6.0 / (predictor + predictor)) ** 0.5
    weight = jax.random.uniform(
        kw, (predictor, predictor), dtype=jnp.float32, minval=-bound, maxval=bound
    )

    x = jax.random.normal(kx, (batch, predictor), dtype=jnp.float32)
    _check(x, weight)

    # multi-tile + ragged batch path (exercises N tiling, padding, masking)
    x2 = jax.random.normal(kx2, (300, predictor), dtype=jnp.float32)
    _check(x2, weight, tile_n=128)

    print("KERNEL_OK")
</pallas_src>

<mosaic_0001>
module attributes {stable_mosaic.version = 11 : i64} {
  func.func @_cluster_loss_kernel(%arg0: i32, %arg1: memref<8x32xf32, #tpu.memory_space<vmem>>, %arg2: memref<32x32xf32, #tpu.memory_space<vmem>>, %arg3: memref<1x32xf32, #tpu.memory_space<vmem>>, %arg4: memref<8x64xf32, #tpu.memory_space<vmem>>, %arg5: memref<1x1xf32, #tpu.memory_space<smem>>) attributes {dimension_semantics = [#tpu.dimension_semantics<parallel>], iteration_bounds = array<i64: 1>, scalar_prefetch = 0 : i64, scratch_operands = 0 : i64, tpu.core_type = #tpu.core_type<tc>, window_params = [{transform_indices = @transform_0, window_bounds = array<i64: 8, 32>}, {pipeline_mode = #tpu.pipeline_mode<synchronous>, transform_indices = @transform_1, window_bounds = array<i64: 32, 32>}, {pipeline_mode = #tpu.pipeline_mode<synchronous>, transform_indices = @transform_2, window_bounds = array<i64: 1, 32>}, {transform_indices = @transform_3, window_bounds = array<i64: 8, 64>}, {transform_indices = @transform_4, window_bounds = array<i64: 1, 1>}]} {
    %c0 = arith.constant 0 : index
    %c0_0 = arith.constant 0 : index
    %0 = vector.load %arg1[%c0, %c0_0] : memref<8x32xf32, #tpu.memory_space<vmem>>, vector<8x32xf32>
    %c0_1 = arith.constant 0 : index
    %c0_2 = arith.constant 0 : index
    %1 = vector.load %arg2[%c0_1, %c0_2] : memref<32x32xf32, #tpu.memory_space<vmem>>, vector<32x32xf32>
    %c0_3 = arith.constant 0 : index
    %c0_4 = arith.constant 0 : index
    %2 = vector.load %arg3[%c0_3, %c0_4] : memref<1x32xf32, #tpu.memory_space<vmem>>, vector<1x32xf32>
    %3 = arith.mulf %0, %0 : vector<8x32xf32>
    %cst = arith.constant dense<0.000000e+00> : vector<8xf32>
    %4 = vector.multi_reduction <add>, %3, %cst [1] : vector<8x32xf32> to vector<8xf32>
    %5 = vector.shape_cast %4 : vector<8xf32> to vector<8x1xf32>
    %cst_5 = arith.constant dense<0.000000e+00> : vector<8x32xf32>
    %6 = tpu.matmul %0, %1, %cst_5 {dimension_numbers = #tpu.dot_dimension_numbers<[1], [0], [0], [1], [0, 0, 1, 1], [], []>, precision = #tpu.contract_precision<fp32>} : vector<8x32xf32>, vector<32x32xf32>, vector<8x32xf32> -> vector<8x32xf32>
    %7 = vector.broadcast %5 : vector<8x1xf32> to vector<8x32xf32>
    %8 = vector.broadcast %2 : vector<1x32xf32> to vector<8x32xf32>
    %9 = arith.addf %7, %8 : vector<8x32xf32>
    %cst_6 = arith.constant 2.000000e+00 : f32
    %10 = vector.broadcast %cst_6 : f32 to vector<8x32xf32>
    %11 = arith.mulf %10, %6 : vector<8x32xf32>
    %12 = arith.subf %9, %11 : vector<8x32xf32>
    %cst_7 = arith.constant 0.000000e+00 : f32
    %13 = vector.broadcast %cst_7 : f32 to vector<8x32xf32>
    %14 = arith.maximumf %12, %13 : vector<8x32xf32>
    %cst_8 = arith.constant 1.000000e+00 : f32
    %15 = vector.broadcast %cst_8 : f32 to vector<8x32xf32>
    %16 = arith.mulf %15, %14 : vector<8x32xf32>
    %cst_9 = arith.constant dense<0x7F800000> : vector<8xf32>
    %17 = vector.multi_reduction <minimumf>, %16, %cst_9 [1] : vector<8x32xf32> to vector<8xf32>
    %18 = vector.shape_cast %17 : vector<8xf32> to vector<8x1xf32>
    %19 = vector.broadcast %18 : vector<8x1xf32> to vector<8x32xf32>
    %20 = arith.subf %16, %19 : vector<8x32xf32>
    %cst_10 = arith.constant -2.000000e+00 : f32
    %21 = vector.broadcast %cst_10 : f32 to vector<8x32xf32>
    %22 = arith.mulf %21, %20 : vector<8x32xf32>
    %23 = math.exp %22 : vector<8x32xf32>
    %cst_11 = arith.constant dense<0.000000e+00> : vector<8xf32>
    %24 = vector.multi_reduction <add>, %23, %cst_11 [1] : vector<8x32xf32> to vector<8xf32>
    %25 = vector.shape_cast %24 : vector<8xf32> to vector<8x1xf32>
    %26 = vector.broadcast %25 : vector<8x1xf32> to vector<8x32xf32>
    %27 = arith.divf %23, %26 : vector<8x32xf32>
    %28 = arith.mulf %16, %27 : vector<8x32xf32>
    %29 = tpu.concatenate %16, %28 in 1 : vector<8x32xf32>, vector<8x32xf32> -> vector<8x64xf32>
    %c0_12 = arith.constant 0 : index
    %c0_13 = arith.constant 0 : index
    %30 = vector.load %arg4[%c0_12, %c0_13] : memref<8x64xf32, #tpu.memory_space<vmem>>, vector<8x64xf32>
    tpu.vector_store %arg4[%c0_12, %c0_13], %29 {strides = array<i32>} : memref<8x64xf32, #tpu.memory_space<vmem>>, vector<8x64xf32>,
    %31 = tpu.iota {dimensions = array<i32: 0>} : vector<8x1xi32>
    %c8_i32 = arith.constant 8 : i32
    %32 = arith.muli %arg0, %c8_i32 : i32
    %33 = vector.broadcast %32 : i32 to vector<8x1xi32>
    %34 = arith.addi %31, %33 : vector<8x1xi32>
    %cst_14 = arith.constant dense<0.000000e+00> : vector<8xf32>
    %35 = vector.multi_reduction <add>, %28, %cst_14 [1] : vector<8x32xf32> to vector<8xf32>
    %36 = vector.shape_cast %35 : vector<8xf32> to vector<8x1xf32>
    %c8_i32_15 = arith.constant 8 : i32
    %37 = vector.broadcast %c8_i32_15 : i32 to vector<8x1xi32>
    %38 = arith.cmpi slt, %34, %37 : vector<8x1xi32>
    %cst_16 = arith.constant 0.000000e+00 : f32
    %39 = vector.broadcast %cst_16 : f32 to vector<8x1xf32>
    %40 = arith.select %38, %36, %39 : vector<8x1xi1>, vector<8x1xf32>
    %41 = vector.shape_cast %40 : vector<8x1xf32> to vector<1x8x1xf32>
    %cst_17 = arith.constant dense<0.000000e+00> : vector<1xf32>
    %42 = vector.multi_reduction <add>, %41, %cst_17 [1, 2] : vector<1x8x1xf32> to vector<1xf32>
    %43 = vector.shape_cast %42 : vector<1xf32> to vector<1x1x1xf32>
    %44 = vector.extract %43[0, 0, 0] : f32 from vector<1x1x1xf32>
    %c0_18 = arith.constant 0 : index
    %c0_19 = arith.constant 0 : index
    %45 = memref.load %arg5[%c0_18, %c0_19] : memref<1x1xf32, #tpu.memory_space<smem>>
    memref.store %44, %arg5[%c0_18, %c0_19] : memref<1x1xf32, #tpu.memory_space<smem>>
    return
  }
  func.func @transform_0(%arg0: i32) -> (i32, i32) {
    %c0_i32 = arith.constant 0 : i32
    %c0_i32_0 = arith.constant 0 : i32
    return %arg0, %c0_i32 : i32, i32
  }
  func.func @transform_1(%arg0: i32) -> (i32, i32) {
    %c0_i32 = arith.constant 0 : i32
    %c0_i32_0 = arith.constant 0 : i32
    %c0_i32_1 = arith.constant 0 : i32
    return %c0_i32, %c0_i32_0 : i32, i32
  }
  func.func @transform_2(%arg0: i32) -> (i32, i32) {
    %c0_i32 = arith.constant 0 : i32
    %c0_i32_0 = arith.constant 0 : i32
    %c0_i32_1 = arith.constant 0 : i32
    return %c0_i32, %c0_i32_0 : i32, i32
  }
  func.func @transform_3(%arg0: i32) -> (i32, i32) {
    %c0_i32 = arith.constant 0 : i32
    %c0_i32_0 = arith.constant 0 : i32
    return %arg0, %c0_i32 : i32, i32
  }
  func.func @transform_4(%arg0: i32) -> (i32, i32) {
    %c0_i32 = arith.constant 0 : i32
    %c0_i32_0 = arith.constant 0 : i32
    return %arg0, %c0_i32 : i32, i32
  }
}

</mosaic_0001>

<bundles_post_ra>
// kernel: tpu_custom_call.1
= control target key start
LH: loop header
LB: loop body
LE: loop exit
PB: predicated region body
PF: predicated region fallthrough
CT: control target
= control target key end

     0   :  { %10 = vsyncpa [#allocation3], 0  ;;  %s934_s0 = inlined_call_operand.hbm [shape: f32[8,32], index: 0, kind: input, shape index: {}]   ;;  %s935_s1 = inlined_call_operand.hbm [shape: f32[32,32], index: 1, kind: input, shape index: {}]   ;;  %s936_s2 = inlined_call_operand.vmem [shape: f32[1,32], index: 2, kind: input, shape index: {}]   ;;  %s937_s3 = inlined_call_operand.hbm [shape: f32[8,64], index: 3, kind: output, shape index: {0}]   ;;  %s938_s4 = inlined_call_operand.hbm [shape: f32[1,1], index: 4, kind: output, shape index: {1}]  }
   0x1   :  { %11 = vsyncpa [#allocation7], 0 }
   0x2   :  { %12 = vsyncpa [#allocation4], 0 }
   0x3   :  { %13 = vsyncpa [#allocation5], 0  ;;  %s813_s15 = smov [#allocation2]   ;;  %s814_s17 = smov [#allocation6]  }
   0x4   :  { %s20_s16 = sshll.u32 %s813_s15, 4  ;;  %s29_s18 = sshll.u32 %s814_s17, 4  ;;  %s21_s16 = int_to_ptr.vmem [resolvable:$true] %s20_s16  ;;  %s30_s18 = int_to_ptr.vmem [resolvable:$true] %s29_s18 }
   0x5   :  { %s745_s19 = scalar_lea.vmem %s21_s16, 128  ;;  %p750_p1 = scmp.lt.s32.totalorder %s21_s16, %s21_s16 }
   0x6   :  { %p746_p0 = scmp.ne.s32.totalorder %s21_s16, %s745_s19  ;;  %p751_p2 = scmp.lt.s32.totalorder %s745_s19, %s745_s19 }
   0x8   :  { %p752_p3 = por %p751_p2, %p750_p1 }
   0xa   :  { %p753_p4 = pnand %p752_p3, %p746_p0 }
   0xc   :  { %756 = shalt.err (!%p753_p4)
}
   0xd   :  { %23 = dma.hbm_to_vmem [thread:$0]  %s934_s0, 128, %s21_s16, [#allocation3]  }
   0xe   :  { %s765_s22 = scalar_lea.vmem %s30_s18, 512  ;;  %p770_p6 = scmp.lt.s32.totalorder %s30_s18, %s30_s18 }
   0xf   :  { %p766_p5 = scmp.ne.s32.totalorder %s30_s18, %s765_s22  ;;  %p771_p7 = scmp.lt.s32.totalorder %s765_s22, %s765_s22 }
  0x11   :  { %p772_p8 = por %p771_p7, %p770_p6 }
  0x13   :  { %p773_p9 = pnand %p772_p8, %p766_p5 }
  0x15   :  { %776 = shalt.err (!%p773_p9)
}
  0x16   :  { %s815_s23 = smov 128   ;;  %s816_s24 = smov 8  }
  0x17   :  { %35 = dma.hbm_to_vmem [thread:$0]  %s935_s1, 512, %s30_s18, [#allocation7], %s815_s23, %s815_s23, %s816_s24  }
  0x18   :  { %805 = dma.done.wait [#allocation3], 128  }
  0x19   :  { %806 = vsyncadd [#allocation3], 4294967168 }
  0x1a   :  { %807 = dma.done.wait [#allocation7], 512  }
  0x1b   :  { %808 = vsyncadd [#allocation7], 4294966784  ;;  %v817_v0 = vmov 0.0   ;;  %vm818_vm0 = vmmov 0   ;;  %vm51_vm1 = vcmask 261120   ;;  %v48_v1 = vld [vmem:[#allocation6 + $0x18] sm:$0xff] }
  0x1c   :  { %656 = vmatprep.subr.mxu0 %v817_v0  ;;  %667 = vmatprep.subr.mxu1 %v817_v0  ;;  %v47_v2 = vld [vmem:[#allocation6 + $0x10] sm:$0xff]  ;;  %v46_v3 = vld [vmem:[#allocation6 + $0x8] sm:$0xff]  ;;  %v859_v4 = vand.u32 4294901760, %v48_v1  ;;  %v45_v7 = vld [vmem:[#allocation6] sm:$0xff]  ;;  %vm583_vm2 = vcmask 7168   ;;  %vm571_vm3 = vcmask 523264  }
  0x1d   :  { %664 = vmatprep.mubr.msk.f32.mxu0 %vm818_vm0, %v817_v0  ;;  %675 = vmatprep.mubr.msk.f32.mxu1 %vm818_vm0, %v817_v0  ;;  %v861_v5 = vand.u32 4294901760, %v47_v2  ;;  %v863_v6 = vand.u32 4294901760, %v46_v3  ;;  %v44_v8 = vld [vmem:[#allocation2] sm:$0xff]  ;;  %v865_v9 = vand.u32 4294901760, %v45_v7  ;;  %s820_s27 = smov [#allocation8]  }
  0x1e   :  { %v56_v10 = vsel %vm51_vm1, %v44_v8, 0  ;;  %v50_v11 = vmul.f32 %v44_v8, %v44_v8  ;;  %657 = vmatpush3.msra.mxu0 %v859_v4  ;;  %v163_v12 = vsub.f32 %v48_v1, %v859_v4  ;;  %v625_v47 = vld [vmem:[%s936_s2] ss:$0 sm:$0xff]  ;;  %s819_s2 = smov 32   ;;  %s602_s28 = sshll.u32 %s820_s27, 4  ;;  %s603_s28 = int_to_ptr.vmem [resolvable:$true] %s602_s28 }
  0x1f   :  { %v870_v13 = vand.u32 4294901760, %v56_v10  ;;  %v170_v14 = vsub.f32 %v47_v2, %v861_v5  ;;  %v177_v15 = vsub.f32 %v46_v3, %v863_v6  ;;  %658 = vmatprep.subr.mxu0 %v817_v0  ;;  %v184_v16 = vsub.f32 %v45_v7, %v865_v9  ;;  %s777_s29 = scalar_lea.vmem %s603_s28, 128  ;;  %p782_p11 = scmp.lt.s32.totalorder %s603_s28, %s603_s28 }
  0x20   :  { %v52_v17 = vsel %vm51_vm1, %v50_v11, 0.0  ;;  %659 = vmatpush3.msra.mxu0 %v861_v5  ;;  %v164_v18 = vand.u32 4294901760, %v163_v12  ;;  %p778_p10 = scmp.ne.s32.totalorder %s603_s28, %s777_s29  ;;  %p783_p12 = scmp.lt.s32.totalorder %s777_s29, %s777_s29 }
  0x21   :  { %v128_v19 = vsub.f32 %v56_v10, %v870_v13  ;;  %v171_v20 = vand.u32 4294901760, %v170_v14  ;;  %v178_v21 = vand.u32 4294901760, %v177_v15  ;;  %53 = vadd.xlane.f32.xlu0 %v52_v17  ;;  %660 = vmatprep.subr.mxu0 %v817_v0  ;;  %v185_v22 = vand.u32 4294901760, %v184_v16 }
  0x22   :  { %661 = vmatpush3.msra.mxu0 %v863_v6  ;;  %v165_v23 = vsub.f32 %v163_v12, %v164_v18  ;;  %p784_p13 = por %p783_p12, %p782_p11 }
  0x23   :  { %v129_v24 = vand.u32 4294901760, %v128_v19  ;;  %v172_v25 = vsub.f32 %v170_v14, %v171_v20  ;;  %v179_v26 = vsub.f32 %v177_v15, %v178_v21  ;;  %662 = vmatprep.subr.mxu0 %v817_v0  ;;  %v186_v30 = vsub.f32 %v184_v16, %v185_v22 }
  0x24   :  { %663 = vmatpush3.msra.mxu0 %v865_v9  ;;  %v166_v27 = vand.u32 4294901760, %v165_v23  ;;  %p785_p0 = pnand %p784_p13, %p778_p10 }
  0x25   :  { %v130_v28 = vsub.f32 %v128_v19, %v129_v24  ;;  %v173_v29 = vand.u32 4294901760, %v172_v25  ;;  %678 = vmatprep.subr.mxu0 %v817_v0  ;;  %v180_v32 = vand.u32 4294901760, %v179_v26  ;;  %v187_v33 = vand.u32 4294901760, %v186_v30 }
  0x26   :  { %668 = vmatpush3.msra.mxu1 %v166_v27 }
  0x27   :  { %v131_v31 = vand.u32 4294901760, %v130_v28  ;;  %669 = vmatprep.subr.mxu1 %v817_v0 }
  0x28   :  { %670 = vmatpush3.msra.mxu1 %v173_v29 }
  0x29   :  { %665 = vmatmul.mubr.f32.vlgmr.msra.gmra.mxu0 %v131_v31  ;;  %671 = vmatprep.subr.mxu1 %v817_v0 }
  0x2a   :  { %679 = vmatpush3.msra.mxu0 %v163_v12  ;;  %672 = vmatpush3.msra.mxu1 %v180_v32 }
  0x2b   :  { %680 = vmatprep.subr.mxu0 %v817_v0  ;;  %673 = vmatprep.subr.mxu1 %v817_v0 }
  0x2c   :  { %681 = vmatpush3.msra.mxu0 %v170_v14  ;;  %674 = vmatpush3.msra.mxu1 %v187_v33 }
  0x2d   :  { %682 = vmatprep.subr.mxu0 %v817_v0  ;;  %676 = vmatmul.mubr.f32.vlgmr.msra.gmra.mxu1 %v870_v13 }
  0x2e   :  { %683 = vmatpush3.msra.mxu0 %v177_v15  ;;  %689 = vmatprep.subr.mxu1 %v817_v0 }
  0x2f   :  { %684 = vmatprep.subr.mxu0 %v817_v0  ;;  %686 = vmatprep.mubr.msk.f32.mxu0 %vm818_vm0, %v817_v0 }
  0x30   :  { %685 = vmatpush3.msra.mxu0 %v184_v16  ;;  %690 = vmatpush3.msra.mxu1 %v859_v4 }
  0x31   :  { %687 = vmatmul.mubr.f32.vlgmr.msra.gmra.mxu0 %v128_v19  ;;  %691 = vmatprep.subr.mxu1 %v817_v0 }
  0x32   :  { %700 = vmatprep.subr.mxu0 %v817_v0  ;;  %692 = vmatpush3.msra.mxu1 %v861_v5 }
  0x33   :  { %701 = vmatpush3.msra.mxu0 %v164_v18  ;;  %693 = vmatprep.subr.mxu1 %v817_v0 }
  0x34   :  { %702 = vmatprep.subr.mxu0 %v817_v0  ;;  %694 = vmatpush3.msra.mxu1 %v863_v6 }
  0x35   :  { %703 = vmatpush3.msra.mxu0 %v171_v20  ;;  %695 = vmatprep.subr.mxu1 %v817_v0 }
  0x36   :  { %704 = vmatprep.subr.mxu0 %v817_v0  ;;  %696 = vmatpush3.msra.mxu1 %v865_v9 }
  0x37   :  { %697 = vmatprep.mubr.msk.f32.mxu1 %vm818_vm0, %v817_v0  ;;  %705 = vmatpush3.msra.mxu0 %v178_v21 }
  0x38   :  { %698 = vmatmul.mubr.f32.vlgmr.msra.gmra.mxu1 %v129_v24  ;;  %706 = vmatprep.subr.mxu0 %v817_v0 }
  0x39   :  { %711 = vmatprep.subr.mxu1 %v817_v0  ;;  %707 = vmatpush3.msra.mxu0 %v185_v22 }
  0x3a   :  { %708 = vmatprep.mubr.msk.f32.mxu0 %vm818_vm0, %v817_v0  ;;  %712 = vmatpush3.msra.mxu1 %v859_v4 }
  0x3b   :  { %709 = vmatmul.mubr.f32.vlgmr.msra.gmra.mxu0 %v870_v13  ;;  %713 = vmatprep.subr.mxu1 %v817_v0 }
  0x3c   :  { %719 = vmatprep.mubr.msk.f32.mxu1 %vm818_vm0, %v817_v0  ;;  %714 = vmatpush3.msra.mxu1 %v861_v5 }
  0x3d   :  { %715 = vmatprep.subr.mxu1 %v817_v0 }
  0x3e   :  { %716 = vmatpush3.msra.mxu1 %v863_v6 }
  0x3f   :  { %717 = vmatprep.subr.mxu1 %v817_v0 }
  0x40   :  { %718 = vmatpush3.msra.mxu1 %v865_v9 }
  0x41   :  { %720 = vmatmul.mubr.f32.vlgmr.msra.gmra.mxu1 %v870_v13 }
  0xaa   :  { %v54_v48 = vpop.xlane.xlu0 %53 }
  0xab   :  { %v549_v52 = vadd.f32 %v625_v47, %v54_v48 }
  0xe9   :  { %v133_v34 = vpop.f32.mrf.mxu0 }
  0xeb   :  { %v666_v35 = vpop.f32.mrf.mxu0 }
  0xed   :  { %v224_v36 = vpop.f32.mrf.mxu1 }
  0xee   :  { %v225_v40 = vadd.f32 %v224_v36, %v133_v34 }
  0xef   :  { %v677_v37 = vpop.f32.mrf.mxu1 }
  0xf1   :  { %v304_v38 = vpop.f32.mrf.mxu0 }
  0xf2   :  { %v305_v43 = vadd.f32 %v304_v38, %v225_v40 }
  0xf3   :  { %v688_v39 = vpop.f32.mrf.mxu0 }
  0xf8   :  { %v381_v41 = vpop.f32.mrf.mxu1 }
  0xf9   :  { %v382_v45 = vadd.f32 %v381_v41, %v305_v43 }
  0xfa   :  { %v699_v42 = vpop.f32.mrf.mxu1 }
  0xfb   :  { %v464_v44 = vpop.f32.mrf.mxu0 }
  0xfc   :  { %v465_v49 = vadd.f32 %v464_v44, %v382_v45 }
  0xfd   :  { %v710_v46 = vpop.f32.mrf.mxu0 }
 0x101   :  { %v539_v50 = vpop.f32.mrf.mxu1 }
 0x102   :  { %v540_v51 = vadd.f32 %v539_v50, %v465_v49 }
 0x103   :  { %v721_v53 = vpop.f32.mrf.mxu1 }
 0x104   :  { %v550_v54 = vmul.f32 2.0, %v540_v51 }
 0x106   :  { %v551_v55 = vsub.f32 %v549_v52, %v550_v54 }
 0x108   :  { %v552_v56 = vmax.f32 %v551_v55, 0.0 }
 0x10a   :  { %v553_v57 = vsel %vm51_vm1, %v552_v56, inf }
 0x10b   :  { %554 = vmin.xlane.f32.xlu0 %v553_v57 }
 0x194   :  { %v555_v58 = vpop.xlane.xlu0 %554 }
 0x195   :  { %v556_v59 = vsub.f32 %v552_v56, %v555_v58 }
 0x197   :  { %v557_v60 = vmul.f32 -2.0, %v556_v59 }
 0x199   :  { %v558_v61 = vmul.f32 1.442695, %v557_v60 }
 0x19b   :  { %733 = vpow2.f32 %v558_v61 }
 0x1a8   :  { %v734_v62 = vpop.eup %733 }
 0x1a9   :  { %v560_v63 = vsel %vm51_vm1, %v734_v62, 0.0 }
 0x1aa   :  { %561 = vadd.xlane.f32.xlu1 %v560_v63 }
 0x233   :  { %v562_v0 = vpop.xlane.xlu1 %561 }
 0x234   :  { %735 = vrcp.f32 %v562_v0 }
 0x241   :  { %v736_v1 = vpop.eup %735 }
 0x242   :  { %v564_v2 = vmul.f32 %v736_v1, %v734_v62 }
 0x244   :  { %v565_v3 = vmul.f32 %v564_v2, %v552_v56 }
 0x246   :  { %v578_v4 = vsel %vm51_vm1, %v565_v3, 0.0 }
 0x247   :  { %579 = vadd.xlane.f32.xlu1 %v578_v4 }
 0x258   :  { %567 = vrot.lane.b32.xlu1 %v565_v3, %s819_s2 }
 0x2d0   :  { %v580_v5 = vpop.xlane.xlu1 %579 }
 0x2d1   :  { %v584_v6 = vsel %vm583_vm2, %v580_v5, 0.0 }
 0x2d2   :  { %585 = vadd.xlane.f32.xlu0 %v584_v6 }
 0x2d4   :  { %v568_v7 = vpop.permute.xlu1 %567 }
 0x2d5   :  { %v570_v8 = vsel %vm51_vm1, %v552_v56, %v568_v7 }
 0x2d6   :  { %572 = vst.msk [vmem:[#allocation8] sm:$0xff] %vm571_vm3, %v570_v8 }
 0x2d7   :  { %788 = shalt.err (!%p785_p0)
}
 0x2d8   :  { %605 = dma.vmem_to_hbm [thread:$0]  %s603_s28, 128, %s937_s3, [#allocation4]  }
 0x2d9   :  { %s821_s7 = smov [#allocation9]  }
 0x35b   :  { %v586_v9 = vpop.xlane.xlu0 %585 }
 0x35c   :  { %v587_v10 = vrot.slane %v586_v9, 4 }
 0x35e   :  { %v588_v11 = vadd.f32 %v587_v10, %v586_v9 }
 0x360   :  { %v589_v12 = vrot.slane %v588_v11, 2 }
 0x362   :  { %v590_v13 = vadd.f32 %v589_v12, %v588_v11 }
 0x364   :  { %v591_v14 = vrot.slane %v590_v13, 1 }
 0x366   :  { %v592_v15 = vadd.f32 %v591_v14, %v590_v13 }
 0x368   :  { %722 = vpush %v592_v15 }
 0x399   :  { %s723_s6 = spop %722 }
 0x39a   :  { %595 = sst [smem:[#allocation9]] %s723_s6 }
 0x39b   :  { %613 = dma.smem_to_hbm %s821_s7, 16, %s938_s4, [#allocation5]  }
 0x39c   :  { %809 = dma.done.wait [#allocation4], 128  }
 0x39d   :  { %810 = vsyncadd [#allocation4], 4294967168 }
 0x39e   :  { %811 = dma.done.wait [#allocation5], 16  }
 0x39f   :  { %812 = vsyncadd [#allocation5], 4294967280 }
 0x3a0   :  { %620 = sfence }
 0x3a1   :  { %621 = vsyncpa [#allocation3], 1 }
 0x3a2   :  { %622 = vsyncpa [#allocation7], 1 }
 0x3a3   :  { %623 = vsyncpa [#allocation4], 1 }
 0x3a4   :  { %624 = vsyncpa [#allocation5], 1 }

</bundles_post_ra>
